<compile_context>
chip_gen: v6e
topology: v6e:2x2x1
jax: 0.10.0
libtpu: 0.0.40
codegen_flags: <defaults>
</compile_context>

<pallas_src>
import functools

import numpy as np
import jax
import jax.numpy as jnp
from jax import lax
from jax.experimental import pallas as pl
from jax.experimental.pallas import tpu as pltpu


# --------------------------- roll-convention probe ---------------------------

def _roll_probe_kernel(x_ref, o_ref):
    o_ref[...] = pltpu.roll(x_ref[...], shift=1, axis=1)


@functools.lru_cache(maxsize=None)
def _roll_is_numpy_convention():
    """True if pltpu.roll(x, s)[i] == x[i - s] (np.roll semantics).

    Resolved once with a tiny probe kernel so the main kernel is robust to the
    rotate sign convention.  Warm this OUTSIDE any jit trace (done in __main__).
    The cached value is a plain Python bool, so it is safe across traces.
    """
    x = jnp.broadcast_to(jnp.arange(128, dtype=jnp.float32)[None, :], (8, 128))
    y = pl.pallas_call(
        _roll_probe_kernel,
        out_shape=jax.ShapeDtypeStruct((8, 128), jnp.float32),
    )(x)
    y = np.asarray(jax.block_until_ready(y))
    # np.roll convention: y[0, 1] == x[0, 0] == 0 ; flipped: y[0, 1] == 2.
    return bool(abs(y[0, 1]) < 0.5)


# --------------------- host-side cached constants (NUMPY) --------------------
# These are lru_cached, so they must return numpy (never jnp) arrays: jnp arrays
# created inside a jit trace would leak tracers across traces.

@functools.lru_cache(maxsize=None)
def _tap_masks_np(h, w):
    """(9, 1, h*w) f32 validity masks, one per 3x3 tap (index kh*3+kw).

    mask[t, 0, i] == 1 iff the source pixel read by tap t for output position i
    lies inside the image (reproduces the conv zero padding after the cyclic
    pltpu.roll in the kernel)."""
    hw = h * w
    row = np.arange(hw) // w
    col = np.arange(hw) % w
    masks = np.empty((9, 1, hw), np.float32)
    for kh in range(3):
        if kh == 0:
            rv = (row != 0).astype(np.float32)        # reads row h-1
        elif kh == 2:
            rv = (row != h - 1).astype(np.float32)    # reads row h+1
        else:
            rv = np.ones(hw, np.float32)
        for kw in range(3):
            if kw == 0:
                cv = (col != 0).astype(np.float32)    # reads col w-1
            elif kw == 2:
                cv = (col != w - 1).astype(np.float32)  # reads col w+1
            else:
                cv = np.ones(hw, np.float32)
            masks[kh * 3 + kw, 0, :] = rv * cv
    return masks


@functools.lru_cache(maxsize=None)
def adaptive_avg_matrix(in_size, out_size):
    """Row-stochastic numpy matrix replicating torch.nn.AdaptiveAvgPool (1-D)."""
    M = np.zeros((out_size, in_size), np.float32)
    for i in range(out_size):
        start = (i * in_size) // out_size
        end = -((-(i + 1) * in_size) // out_size)  # ceil
        M[i, start:end] = 1.0 / (end - start)
    return M


@functools.lru_cache(maxsize=None)
def bilinear_matrix(in_size, out_size):
    """1-D bilinear interpolation numpy matrix, PyTorch align_corners=False."""
    M = np.zeros((out_size, in_size), np.float32)
    scale = in_size / out_size
    for i in range(out_size):
        src = max((i + 0.5) * scale - 0.5, 0.0)
        i0 = int(np.floor(src))
        i1 = min(i0 + 1, in_size - 1)
        lam = src - i0
        M[i, i0] += 1.0 - lam
        M[i, i1] += lam
    return M


@functools.lru_cache(maxsize=None)
def _vmem_limit_bytes():
    """Per-generation scoped-VMEM limit: ~75% of capacity, safe 64 MiB fallback."""
    try:
        cap = int(pltpu.get_tpu_info().vmem_capacity_bytes)
    except Exception:
        return 64 * 1024 * 1024
    return max(32 * 1024 * 1024, min(cap * 3 // 4, 100 * 1024 * 1024))


# ----------------------------- Pallas kernel --------------------------------

def _bottleneck_kernel(mask_ref, x_ref, w_ref, b_ref, o_ref, *,
                       img_w, roll_sign, pack_kw):
    # mask_ref: (9, 1, HW) f32   per-tap validity masks (kh*3+kw)
    # x_ref:    (1, TK, HW) bf16 channels-major, spatially flattened input
    # w_ref:    pack_kw: (3, 3*TN, TK) bf16   else: (3, 3, TN, TK) bf16
    # b_ref:    (TN, 1) f32      bias
    # o_ref:    (1, TN, HW) f32  output block; k-resident accumulator
    TN = o_ref.shape[1]
    HW = o_ref.shape[2]
    k = pl.program_id(2)

    @pl.when(k == 0)
    def _init():
        # Bias folded into the accumulator init (output block is resident across
        # the Cin reduction because its block index is constant along k).
        o_ref[0] = jnp.broadcast_to(b_ref[...], (TN, HW))

    x = x_ref[0]                                           # (TK, HW) bf16

    for kh in range(3):
        if pack_kw:
            # Small-TN path: one (3*TN, TK) x (TK, HW) matmul per kernel row
            # (weights pre-laid-out in the wrapper, no in-kernel reshape).
            y3 = jnp.dot(w_ref[kh], x, preferred_element_type=jnp.float32)
        row = None
        for kw in range(3):
            if pack_kw:
                y = y3[kw * TN:(kw + 1) * TN, :]            # (TN, HW)
            else:
                # TN >= MXU rows: per-tap (TN,TK)x(TK,HW) dot, fused immediately.
                y = jnp.dot(w_ref[kh, kw], x, preferred_element_type=jnp.float32)
            # Spatial tap offset in flattened (h*W + w) coordinates:
            # contribution[i] = y[i + d]  -> cyclic roll on the lane axis.
            d = (kh - 1) * img_w + (kw - 1)
            if d != 0:
                y = pltpu.roll(y, shift=(roll_sign * d) % HW, axis=1)
            tap = kh * 3 + kw
            if tap != 4:                                    # centre tap: no mask
                y = y * mask_ref[tap]                       # (1, HW) broadcast
            row = y if row is None else row + y
        o_ref[0] = o_ref[0] + row                           # 3 acc RMWs per step

    @pl.when(k == pl.num_programs(2) - 1)
    def _finalize():
        o_ref[0] = jnp.maximum(o_ref[0], 0.0)               # ReLU in place


def bottleneck_conv3x3_relu(x_nchw, w_hwio, bias):
    """3x3 conv (stride 1, pad 1, NCHW) + bias + ReLU via a Pallas TPU kernel."""
    B, Cin, H, W = x_nchw.shape
    assert w_hwio.shape[0] == 3 and w_hwio.shape[1] == 3 and w_hwio.shape[2] == Cin
    Cout = w_hwio.shape[3]
    HW = H * W

    # Tile sizes: MXU-friendly multiples of 128 when they divide; full dim otherwise.
    TN = next((c for c in (256, 128) if Cout % c == 0), Cout)
    TK = next((c for c in (512, 256, 128) if Cin % c == 0), Cin)
    # TODO(synk): pad Cin/Cout to a multiple of 128 for pathological production
    # configs where the full-dimension fallback would blow the v7x VMEM budget.

    # v7x has 2 TensorCores: make sure the parallel grid axes carry >= 2 iterations.
    if B * (Cout // TN) < 2 and TN >= 256 and Cout % 128 == 0:
        TN = 128

    # Pack the 3 kw taps into one wider matmul only when TN underfills MXU rows.
    pack_kw = (TN < 128) and (TN == Cout)

    # Free row-major reshape; astype is a no-op when the concat is already bf16.
    x2d = x_nchw.reshape(B, Cin, HW).astype(jnp.bfloat16)
    w_t = jnp.transpose(w_hwio, (0, 1, 3, 2)).astype(jnp.bfloat16)  # (3,3,Cout,Cin)
    if pack_kw:
        w_arg = w_t.reshape(3, 3 * Cout, Cin)   # pre-laid-out packed weights
        w_spec = pl.BlockSpec((3, 3 * TN, TK), lambda b, j, k: (0, 0, k))
    else:
        w_arg = w_t
        w_spec = pl.BlockSpec((3, 3, TN, TK), lambda b, j, k: (0, 0, j, k))
    b2d = bias.astype(jnp.float32).reshape(Cout, 1)
    masks = _tap_masks_np(H, W)                 # numpy (9,1,HW), safe to cache

    roll_sign = -1 if _roll_is_numpy_convention() else 1
    kernel = functools.partial(_bottleneck_kernel, img_w=W, roll_sign=roll_sign,
                               pack_kw=pack_kw)

    out = pl.pallas_call(
        kernel,
        out_shape=jax.ShapeDtypeStruct((B, Cout, HW), jnp.float32),
        grid_spec=pltpu.PrefetchScalarGridSpec(
            num_scalar_prefetch=0,
            # NOTE: the Cin (k) axis MUST stay innermost -- the k==0 init /
            # last-k ReLU gating and the k-resident output accumulator rely on it.
            grid=(B, Cout // TN, Cin // TK),
            in_specs=[
                pl.BlockSpec((9, 1, HW), lambda b, j, k: (0, 0, 0)),
                pl.BlockSpec((1, TK, HW), lambda b, j, k: (b, k, 0)),
                w_spec,
                pl.BlockSpec((TN, 1), lambda b, j, k: (j, 0)),
            ],
            out_specs=pl.BlockSpec((1, TN, HW), lambda b, j, k: (b, j, 0)),
        ),
        compiler_params=pltpu.CompilerParams(
            dimension_semantics=("parallel", "parallel", "arbitrary"),
            vmem_limit_bytes=_vmem_limit_bytes(),
        ),
        cost_estimate=pl.CostEstimate(
            flops=2 * 9 * B * Cin * Cout * HW,
            transcendentals=0,
            bytes_accessed=(B * Cin * HW * 2 + 9 * Cin * Cout * 2
                            + B * Cout * HW * 4 + Cout * 4 + 9 * HW * 4),
        ),
    )(masks, x2d, w_arg, b2d)
    # TODO(synk): production PSP sizes (H=W>=64, Cin_total~4096) also want an
    # H*W grid axis with halo handling to keep per-step blocks small on v7x.

    return out.reshape(B, Cout, H, W)           # f32, matches the module's output


# ----------------------------- JAX glue --------------------------------------

def group_norm_nchw(y, gamma, beta, num_groups, eps=1e-5):
    B, C, H, W = y.shape
    yg = y.reshape(B, num_groups, C // num_groups, H, W)
    mean = yg.mean(axis=(2, 3, 4), keepdims=True)
    var = ((yg - mean) ** 2).mean(axis=(2, 3, 4), keepdims=True)
    yn = ((yg - mean) / jnp.sqrt(var + eps)).reshape(B, C, H, W)
    return yn * gamma[None, :, None, None] + beta[None, :, None, None]


def init_psp_params(key, in_channels, channels, pool_scales):
    """Deterministic synthetic parameter init (shapes match the PyTorch module)."""
    c_in = in_channels[-1]
    ks = jax.random.split(key, 3 * len(pool_scales) + 2)
    ppm = []
    for i in range(len(pool_scales)):
        w1 = jax.random.normal(ks[3 * i], (c_in, channels), jnp.float32) / np.sqrt(c_in)
        gamma = 1.0 + 0.1 * jax.random.normal(ks[3 * i + 1], (channels,), jnp.float32)
        beta = 0.1 * jax.random.normal(ks[3 * i + 2], (channels,), jnp.float32)
        ppm.append((w1, gamma, beta))
    cin_total = c_in + len(pool_scales) * channels
    w3 = jax.random.normal(ks[-2], (3, 3, cin_total, channels),
                           jnp.float32) / np.sqrt(9 * cin_total)
    b3 = 0.01 * jax.random.normal(ks[-1], (channels,), jnp.float32)
    return {"ppm": ppm, "w3": w3, "b3": b3}


def psp_forward(params, inputs_nchw, pool_scales, num_groups):
    # _transform_inputs('multiple_select') keeps the list; psp_forward uses the last.
    x = inputs_nchw[-1]                                  # (B, C_in, H, W), NCHW
    B, C_in, H, W = x.shape

    # bf16 cast happens per-branch BEFORE concat so the concatenated tensor never
    # takes an extra f32 HBM round trip on its way into the Pallas kernel.
    outs = [x.astype(jnp.bfloat16)]
    for scale, (w1, gamma, beta) in zip(pool_scales, params["ppm"]):
        Mh = adaptive_avg_matrix(H, scale)               # numpy constants
        Mw = adaptive_avg_matrix(W, scale)
        pooled = jnp.einsum("ph,bchw,qw->bcpq", Mh, x, Mw)   # adaptive avg pool
        y = jnp.einsum("bcpq,cd->bdpq", pooled, w1)          # 1x1 conv, no bias
        y = group_norm_nchw(y, gamma, beta, num_groups)      # GroupNorm (f32)
        y = jnp.maximum(y, 0.0)                              # ReLU
        Uh = bilinear_matrix(scale, H)
        Uw = bilinear_matrix(scale, W)
        up = jnp.einsum("hp,bdpq,wq->bdhw", Uh, y, Uw)       # bilinear upsample
        outs.append(up.astype(jnp.bfloat16))

    cat = jnp.concatenate(outs, axis=1)                      # (B, C_in+4*C, H, W) bf16
    return bottleneck_conv3x3_relu(cat, params["w3"], params["b3"])  # Pallas hot path
    # TODO(synk): BaseDecodeHead defines Dropout2d but it is never applied in
    # psp_forward, so it is intentionally omitted here.


# ----------------------------- demo / self-test ------------------------------

if __name__ == "__main__":
    B, H, W = 2, 16, 16
    in_channels = [16, 32]           # multiple_select -> list of input channels
    channels = 32
    pool_scales = (1, 2, 3, 6)
    num_groups = min(256, channels)  # reference uses GN(256); channels are small here

    # Resolve the pltpu.roll convention once, eagerly, before any jit tracing.
    _ = _roll_is_numpy_convention()

    key = jax.random.PRNGKey(0)
    k0, k1, kp = jax.random.split(key, 3)
    f0 = jax.random.normal(k0, (B, in_channels[0], H, W), jnp.float32)
    f1 = jax.random.normal(k1, (B, in_channels[1], H, W), jnp.float32)
    params = init_psp_params(kp, in_channels, channels, pool_scales)

    fwd = jax.jit(psp_forward, static_argnums=(2, 3))
    out = jax.block_until_ready(fwd(params, [f0, f1], pool_scales, num_groups))
    assert out.shape == (B, channels, H, W)
    assert bool(jnp.all(jnp.isfinite(out)))

    def conv_ref(x, w, b):
        return jnp.maximum(
            lax.conv_general_dilated(
                x.astype(jnp.bfloat16), w.astype(jnp.bfloat16),
                window_strides=(1, 1), padding=((1, 1), (1, 1)),
                dimension_numbers=("NCHW", "HWIO", "NCHW"),
                preferred_element_type=jnp.float32)
            + b.reshape(1, -1, 1, 1), 0.0)

    # Cross-check 1: packed small-TN path (Cout=32) against lax.conv.
    cin_total = in_channels[-1] + len(pool_scales) * channels
    xt = jax.random.normal(jax.random.PRNGKey(1), (B, cin_total, H, W), jnp.float32)
    got = bottleneck_conv3x3_relu(xt, params["w3"], params["b3"])
    np.testing.assert_allclose(np.asarray(got),
                               np.asarray(conv_ref(xt, params["w3"], params["b3"])),
                               rtol=1e-2, atol=1e-2)

    # Cross-check 2: un-packed path (Cout=128 -> TN=128, per-tap dots).
    kx, kw2, kb2 = jax.random.split(jax.random.PRNGKey(2), 3)
    x2 = jax.random.normal(kx, (1, cin_total, H, W), jnp.float32)
    w2 = jax.random.normal(kw2, (3, 3, cin_total, 128), jnp.float32) / np.sqrt(9 * cin_total)
    b2 = 0.01 * jax.random.normal(kb2, (128,), jnp.float32)
    got2 = bottleneck_conv3x3_relu(x2, w2, b2)
    np.testing.assert_allclose(np.asarray(got2),
                               np.asarray(conv_ref(x2, w2, b2)),
                               rtol=1e-2, atol=1e-2)

    print("KERNEL_OK")
</pallas_src>

<mosaic_0001>
module attributes {stable_mosaic.version = 11 : i64} {
  func.func @_roll_probe_kernel(%arg0: memref<8x128xf32, #tpu.memory_space<vmem>>, %arg1: memref<8x128xf32, #tpu.memory_space<vmem>>) attributes {dimension_semantics = [], scalar_prefetch = 0 : i64, scratch_operands = 0 : i64, tpu.core_type = #tpu.core_type<tc>} {
    %c0 = arith.constant 0 : index
    %c0_0 = arith.constant 0 : index
    %0 = vector.load %arg0[%c0, %c0_0] : memref<8x128xf32, #tpu.memory_space<vmem>>, vector<8x128xf32>
    %c1_i32 = arith.constant 1 : i32
    %1 = tpu.dynamic_rotate %0 by %c1_i32 dim 1 : vector<8x128xf32>, i32 -> vector<8x128xf32>
    %c0_1 = arith.constant 0 : index
    %c0_2 = arith.constant 0 : index
    %2 = vector.load %arg1[%c0_1, %c0_2] : memref<8x128xf32, #tpu.memory_space<vmem>>, vector<8x128xf32>
    tpu.vector_store %arg1[%c0_1, %c0_2], %1 {strides = array<i32>} : memref<8x128xf32, #tpu.memory_space<vmem>>, vector<8x128xf32>,
    return
  }
}

</mosaic_0001>

<bundles_post_ra>
// kernel: tpu_custom_call.1
= control target key start
LH: loop header
LB: loop body
LE: loop exit
PB: predicated region body
PF: predicated region fallthrough
CT: control target
= control target key end

     0   :  { %6 = vsyncpa [#allocation3], 0  ;;  %s106_s0 = inlined_call_operand.hbm [shape: f32[8,128], index: 0, kind: input, shape index: {}]   ;;  %s107_s1 = inlined_call_operand.hbm [shape: f32[8,128], index: 1, kind: output, shape index: {}]  }
   0x1   :  { %7 = vsyncpa [#allocation4], 0  ;;  %s87_s6 = smov [#allocation2]  }
   0x2   :  { %s14_s7 = sshll.u32 %s87_s6, 4  ;;  %s15_s7 = int_to_ptr.vmem [resolvable:$true] %s14_s7 }
   0x3   :  { %s51_s8 = scalar_lea.vmem %s15_s7, 128  ;;  %p56_p1 = scmp.lt.s32.totalorder %s15_s7, %s15_s7 }
   0x4   :  { %p52_p0 = scmp.ne.s32.totalorder %s15_s7, %s51_s8  ;;  %p57_p2 = scmp.lt.s32.totalorder %s51_s8, %s51_s8 }
   0x6   :  { %p58_p3 = por %p57_p2, %p56_p1 }
   0x8   :  { %p59_p4 = pnand %p58_p3, %p52_p0 }
   0xa   :  { %62 = shalt.err (!%p59_p4)
}
   0xb   :  { %17 = dma.hbm_to_vmem [thread:$0]  %s106_s0, 128, %s15_s7, [#allocation3]  }
   0xc   :  { %83 = dma.done.wait [#allocation3], 128  }
   0xd   :  { %84 = vsyncadd [#allocation3], 4294967168  ;;  %v21_v0 = vld [vmem:[#allocation2] sm:$0xff]  ;;  %s88_s11 = smov 1   ;;  %s89_s12 = smov [#allocation5]  }
   0xe   :  { %22 = vrot.lane.b32.xlu0 %v21_v0, %s88_s11  ;;  %s31_s13 = sshll.u32 %s89_s12, 4  ;;  %s32_s13 = int_to_ptr.vmem [resolvable:$true] %s31_s13 }
   0xf   :  { %s63_s14 = scalar_lea.vmem %s32_s13, 128  ;;  %p68_p6 = scmp.lt.s32.totalorder %s32_s13, %s32_s13 }
  0x10   :  { %p64_p5 = scmp.ne.s32.totalorder %s32_s13, %s63_s14  ;;  %p69_p7 = scmp.lt.s32.totalorder %s63_s14, %s63_s14 }
  0x12   :  { %p70_p8 = por %p69_p7, %p68_p6 }
  0x14   :  { %p71_p9 = pnand %p70_p8, %p64_p5 }
  0x80   :  { %v23_v1 = vpop.permute.xlu0 %22 }
  0x81   :  { %24 = vst [vmem:[#allocation5] sm:$0xff] %v23_v1 }
  0x82   :  { %74 = shalt.err (!%p71_p9)
}
  0x83   :  { %34 = dma.vmem_to_hbm [thread:$0]  %s32_s13, 128, %s107_s1, [#allocation4]  }
  0x84   :  { %85 = dma.done.wait [#allocation4], 128  }
  0x85   :  { %86 = vsyncadd [#allocation4], 4294967168 }
  0x86   :  { %38 = vsyncpa [#allocation3], 1 }
  0x87   :  { %39 = vsyncpa [#allocation4], 1 }

</bundles_post_ra>
